<compile_context>
chip_gen: v7x
topology: tpu7x:2x2x1
jax: 0.10.0
libtpu: 0.0.40
codegen_flags: <defaults>
</compile_context>

<pallas_src>
import functools
import numpy as np
import jax
import jax.numpy as jnp
from jax.experimental import pallas as pl
from jax.experimental.pallas import tpu as pltpu

# TODO(synk): `self.alpha` is never defined in the reference module; fixed to
# the common SSIM/L1 mixing weight.
ALPHA = 0.84
WINDOW_SIZE = 11
SIGMA = 1.5
C1 = 0.01 ** 2
C2 = 0.03 ** 2


def _gaussian_window(window_size=WINDOW_SIZE, sigma=SIGMA):
    coords = np.arange(window_size, dtype=np.float64) - window_size // 2
    g = np.exp(-(coords ** 2) / (2.0 * sigma ** 2))
    return (g / g.sum()).astype(np.float32)


def _conv_matrix(size, window):
    """M s.t. (M @ v) == zero-padded 'same' 1-D cross-correlation of v.

    The Gaussian window is symmetric, so M == M.T (lets H==W share one matrix).
    """
    pad = len(window) // 2
    m = np.zeros((size, size), dtype=np.float32)
    for i in range(size):
        for k, w in enumerate(window):
            j = i - pad + k
            if 0 <= j < size:
                m[i, j] = w
    return m


def _vmem_capacity_bytes():
    try:
        return int(pltpu.get_tpu_info().vmem_capacity_bytes)
    except Exception:
        return 64 << 20            # conservative (v7x-sized) fallback


def _choose_batch(P, Hp, W, budget_bytes):
    """Largest divisor of P whose per-step VMEM working set fits the budget.

    TODO(synk): a prime/odd P still degrades to B=1; padding P with masked
    planes would avoid that worst case but is not implemented here.
    """
    per_plane = 56 * Hp * W                          # ~live VMEM bytes per plane
    fixed = 64 * Hp * W + 4 * (Hp * Hp + W * W)      # B-independent temps + matrices
    max_b = max(1, (budget_bytes - fixed) // per_plane)
    max_b = min(max_b, P, 8)                         # 8 bounds the 5*B row-pass unroll
    if P >= 2:
        max_b = min(max_b, P // 2)                   # >=2 chunks -> both v7x TCs busy
    best = 1
    for b in range(1, max_b + 1):
        if P % b == 0:
            best = b
    return best


def _ssim_l1_body(x_ref, y_ref, gh, gwt, ssim_ref, l1_ref, *, h_true):
    """One chunk of B image planes.

    gh : (Hp, Hp) bf16 row-blur matrix (applied on the left).
    gwt: (W, W)   bf16 column-blur matrix, pre-transposed (applied on the right).
    """
    xf = x_ref[...].astype(jnp.float32)              # (B, Hp, W)
    yf = y_ref[...].astype(jnp.float32)
    B, Hp, W = xf.shape

    # L1 partial sum (padded rows are zero in both images -> contribute 0).
    l1_sum = jnp.sum(jnp.sum(jnp.abs(xf - yf), axis=0), axis=0, keepdims=True)

    # Column blur: 5 fused 2-D matmuls sharing the same weight-stationary gwt
    # RHS (no concatenate / stacking copy), bf16 inputs, f32 MXU accumulation.
    # Hp % 8 == 0, so the (B,Hp,W)->(B*Hp,W) reshape is a free view.
    def col_blur(v_f32):
        v = v_f32.reshape(B * Hp, W).astype(jnp.bfloat16)
        t = jnp.dot(v, gwt, preferred_element_type=jnp.float32)
        return t.astype(jnp.bfloat16)                # (B*Hp, W)

    t_x = col_blur(xf)
    t_y = col_blur(yf)
    t_x2 = col_blur(xf * xf)
    t_y2 = col_blur(yf * yf)
    t_xy = col_blur(xf * yf)

    # Row blur + SSIM map, one plane at a time.  gh lives in a single (Hp,Hp)
    # bf16 buffer (no broadcast); all dots are plain 2-D MXU matmuls.
    # TODO(synk): for >=512^2 images, exploit the 11-wide band of gh/gwt
    # instead of the dense K=W/H contraction.
    ssim_acc = jnp.zeros((Hp, W), jnp.float32)
    for b in range(B):
        rows = slice(b * Hp, (b + 1) * Hp)
        mu_x = jnp.dot(gh, t_x[rows], preferred_element_type=jnp.float32)
        mu_y = jnp.dot(gh, t_y[rows], preferred_element_type=jnp.float32)
        e_x2 = jnp.dot(gh, t_x2[rows], preferred_element_type=jnp.float32)
        e_y2 = jnp.dot(gh, t_y2[rows], preferred_element_type=jnp.float32)
        e_xy = jnp.dot(gh, t_xy[rows], preferred_element_type=jnp.float32)

        mu_x2 = mu_x * mu_x
        mu_y2 = mu_y * mu_y
        mu_xy = mu_x * mu_y
        sigma_x = e_x2 - mu_x2
        sigma_y = e_y2 - mu_y2
        sigma_xy = e_xy - mu_xy

        num = (2.0 * mu_xy + C1) * (2.0 * sigma_xy + C2)
        den = (mu_x2 + mu_y2 + C1) * (sigma_x + sigma_y + C2)
        ssim_acc = ssim_acc + num * pl.reciprocal(den, approx=True)   # EUP divide

    if h_true != Hp:
        # Zero-padded rows would each contribute SSIM ~= 1; mask them out.
        row_ids = jax.lax.broadcasted_iota(jnp.int32, (Hp, W), 0)
        ssim_acc = jnp.where(row_ids < h_true, ssim_acc, 0.0)

    # Tiny (1,1,W) per-chunk partial sums -> negligible output HBM traffic;
    # the final cross-lane reduction + loss combine happen in plain JAX.
    ssim_ref[...] = jnp.sum(ssim_acc, axis=0, keepdims=True).reshape(1, 1, W)
    l1_ref[...] = l1_sum.reshape(1, 1, W)


def _make_kernel(h_true, shared_g):
    if shared_g:
        def kernel(x_ref, y_ref, g_ref, ssim_ref, l1_ref):
            g = g_ref[...]          # symmetric conv matrix serves both passes
            _ssim_l1_body(x_ref, y_ref, g, g, ssim_ref, l1_ref, h_true=h_true)
        return kernel

    def kernel(x_ref, y_ref, gh_ref, gwt_ref, ssim_ref, l1_ref):
        _ssim_l1_body(x_ref, y_ref, gh_ref[...], gwt_ref[...], ssim_ref, l1_ref,
                      h_true=h_true)
    return kernel


@functools.partial(jax.jit, static_argnames=("training",))
def pix2pix_loss(x, label, training=False):
    """x, label: (N, C, H, W). Returns loss (training) or (loss, ssim, l1)."""
    N, C, H, W = x.shape
    P = N * C

    # Keep the native dtype for the HBM->VMEM DMA; the kernel casts in VMEM.
    xp = x.reshape(P, H, W)
    yp = label.reshape(P, H, W)

    # Pad H to a multiple of 8 so the in-kernel reshape feeding the fused
    # column-blur matmul is layout-preserving; padded rows are masked.
    Hp = -(-H // 8) * 8
    if Hp != H:
        xp = jnp.pad(xp, ((0, 0), (0, Hp - H), (0, 0)))
        yp = jnp.pad(yp, ((0, 0), (0, Hp - H), (0, 0)))

    vmem_cap = _vmem_capacity_bytes()
    budget = min((vmem_cap * 3) // 8, 48 << 20)       # ~24 MiB v7x, ~48 MiB v5e/v6e
    vmem_limit = int(min((vmem_cap * 3) // 4, 100 << 20))

    B = _choose_batch(P, Hp, W, budget)
    num_chunks = P // B

    # Gaussian blur matrices, built once in bf16 (halves DMA + VMEM; MXU runs
    # the blur matmuls at bf16 rate with f32 accumulation).
    win = _gaussian_window()
    shared_g = (Hp == W)                               # symmetric matrix -> share it
    gwt = jnp.asarray(_conv_matrix(W, win).T, dtype=jnp.bfloat16)
    if shared_g:
        g_inputs = (gwt,)
    else:
        g_inputs = (jnp.asarray(_conv_matrix(Hp, win), dtype=jnp.bfloat16), gwt)

    # Grid-invariant Gaussian matrices: single-buffered (no double-buffer VMEM).
    g_specs = [pl.BlockSpec(g.shape, lambda i: (0, 0),
                            pipeline_mode=pl.Buffered(1))
               for g in g_inputs]

    part_shape = jax.ShapeDtypeStruct((num_chunks, 1, W), jnp.float32)
    ssim_parts, l1_parts = pl.pallas_call(
        _make_kernel(H, shared_g),
        out_shape=(part_shape, part_shape),
        grid_spec=pltpu.PrefetchScalarGridSpec(
            num_scalar_prefetch=0,
            grid=(num_chunks,),
            in_specs=[
                pl.BlockSpec((B, Hp, W), lambda i: (i, 0, 0)),
                pl.BlockSpec((B, Hp, W), lambda i: (i, 0, 0)),
            ] + g_specs,
            out_specs=(
                pl.BlockSpec((1, 1, W), lambda i: (i, 0, 0)),
                pl.BlockSpec((1, 1, W), lambda i: (i, 0, 0)),
            ),
        ),
        compiler_params=pltpu.CompilerParams(
            dimension_semantics=("parallel",),
            vmem_limit_bytes=vmem_limit),
    )(xp, yp, *g_inputs)

    total = float(P * H * W)
    ssim_mean = jnp.sum(ssim_parts) / total
    l1_mean = jnp.sum(l1_parts) / total
    loss = (1.0 - ALPHA) * (1.0 - ssim_mean) + ALPHA * l1_mean

    if training:
        return loss
    return loss, ssim_mean, l1_mean


if __name__ == "__main__":
    key = jax.random.PRNGKey(0)
    kx, ky = jax.random.split(key)
    N, C, H, W = 2, 4, 16, 16
    x = jax.random.uniform(kx, (N, C, H, W), dtype=jnp.float32)
    label = jax.random.uniform(ky, (N, C, H, W), dtype=jnp.float32)

    loss, ssim, l1 = pix2pix_loss(x, label, training=False)
    jax.block_until_ready((loss, ssim, l1))

    # sanity: identical images -> ssim ~ 1, l1 = 0, loss ~ 0
    loss_same = pix2pix_loss(x, x, training=True)
    jax.block_until_ready(loss_same)
    assert abs(float(loss_same)) < 5e-3, float(loss_same)
    assert bool(jnp.isfinite(loss)) and bool(jnp.isfinite(ssim)) and bool(jnp.isfinite(l1))

    print("KERNEL_OK")
</pallas_src>

<mosaic_0001>
module attributes {stable_mosaic.version = 11 : i64} {
  func.func @kernel(%arg0: i32, %arg1: memref<4x16x16xf32, #tpu.memory_space<vmem>>, %arg2: memref<4x16x16xf32, #tpu.memory_space<vmem>>, %arg3: memref<16x16xbf16, #tpu.memory_space<vmem>>, %arg4: memref<1x1x16xf32, #tpu.memory_space<vmem>>, %arg5: memref<1x1x16xf32, #tpu.memory_space<vmem>>) attributes {dimension_semantics = [#tpu.dimension_semantics<parallel>], iteration_bounds = array<i64: 2>, scalar_prefetch = 0 : i64, scratch_operands = 0 : i64, tpu.core_type = #tpu.core_type<tc>, window_params = [{transform_indices = @transform_0, window_bounds = array<i64: 4, 16, 16>}, {transform_indices = @transform_1, window_bounds = array<i64: 4, 16, 16>}, {pipeline_mode = #tpu.pipeline_mode<synchronous>, transform_indices = @transform_2, window_bounds = array<i64: 16, 16>}, {transform_indices = @transform_3, window_bounds = array<i64: 1, 1, 16>}, {transform_indices = @transform_4, window_bounds = array<i64: 1, 1, 16>}]} {
    %c0 = arith.constant 0 : index
    %c0_0 = arith.constant 0 : index
    %0 = vector.load %arg3[%c0, %c0_0] : memref<16x16xbf16, #tpu.memory_space<vmem>>, vector<16x16xbf16>
    %c0_1 = arith.constant 0 : index
    %c0_2 = arith.constant 0 : index
    %c0_3 = arith.constant 0 : index
    %1 = vector.load %arg1[%c0_1, %c0_2, %c0_3] : memref<4x16x16xf32, #tpu.memory_space<vmem>>, vector<4x16x16xf32>
    %c0_4 = arith.constant 0 : index
    %c0_5 = arith.constant 0 : index
    %c0_6 = arith.constant 0 : index
    %2 = vector.load %arg2[%c0_4, %c0_5, %c0_6] : memref<4x16x16xf32, #tpu.memory_space<vmem>>, vector<4x16x16xf32>
    %3 = arith.subf %1, %2 : vector<4x16x16xf32>
    %4 = math.absf %3 : vector<4x16x16xf32>
    %cst = arith.constant dense<0.000000e+00> : vector<16x16xf32>
    %5 = vector.multi_reduction <add>, %4, %cst [0] : vector<4x16x16xf32> to vector<16x16xf32>
    %cst_7 = arith.constant dense<0.000000e+00> : vector<16xf32>
    %6 = vector.multi_reduction <add>, %5, %cst_7 [0] : vector<16x16xf32> to vector<16xf32>
    %7 = vector.shape_cast %6 : vector<16xf32> to vector<1x16xf32>
    %8 = vector.shape_cast %1 : vector<4x16x16xf32> to vector<64x16xf32>
    %9 = arith.truncf %8 : vector<64x16xf32> to vector<64x16xbf16>
    %cst_8 = arith.constant dense<0.000000e+00> : vector<64x16xf32>
    %10 = tpu.matmul %9, %0, %cst_8 {dimension_numbers = #tpu.dot_dimension_numbers<[1], [0], [0], [1], [0, 0, 1, 1], [], []>} : vector<64x16xbf16>, vector<16x16xbf16>, vector<64x16xf32> -> vector<64x16xf32>
    %11 = arith.truncf %10 : vector<64x16xf32> to vector<64x16xbf16>
    %12 = vector.shape_cast %2 : vector<4x16x16xf32> to vector<64x16xf32>
    %13 = arith.truncf %12 : vector<64x16xf32> to vector<64x16xbf16>
    %cst_9 = arith.constant dense<0.000000e+00> : vector<64x16xf32>
    %14 = tpu.matmul %13, %0, %cst_9 {dimension_numbers = #tpu.dot_dimension_numbers<[1], [0], [0], [1], [0, 0, 1, 1], [], []>} : vector<64x16xbf16>, vector<16x16xbf16>, vector<64x16xf32> -> vector<64x16xf32>
    %15 = arith.truncf %14 : vector<64x16xf32> to vector<64x16xbf16>
    %16 = arith.mulf %1, %1 : vector<4x16x16xf32>
    %17 = vector.shape_cast %16 : vector<4x16x16xf32> to vector<64x16xf32>
    %18 = arith.truncf %17 : vector<64x16xf32> to vector<64x16xbf16>
    %cst_10 = arith.constant dense<0.000000e+00> : vector<64x16xf32>
    %19 = tpu.matmul %18, %0, %cst_10 {dimension_numbers = #tpu.dot_dimension_numbers<[1], [0], [0], [1], [0, 0, 1, 1], [], []>} : vector<64x16xbf16>, vector<16x16xbf16>, vector<64x16xf32> -> vector<64x16xf32>
    %20 = arith.truncf %19 : vector<64x16xf32> to vector<64x16xbf16>
    %21 = arith.mulf %2, %2 : vector<4x16x16xf32>
    %22 = vector.shape_cast %21 : vector<4x16x16xf32> to vector<64x16xf32>
    %23 = arith.truncf %22 : vector<64x16xf32> to vector<64x16xbf16>
    %cst_11 = arith.constant dense<0.000000e+00> : vector<64x16xf32>
    %24 = tpu.matmul %23, %0, %cst_11 {dimension_numbers = #tpu.dot_dimension_numbers<[1], [0], [0], [1], [0, 0, 1, 1], [], []>} : vector<64x16xbf16>, vector<16x16xbf16>, vector<64x16xf32> -> vector<64x16xf32>
    %25 = arith.truncf %24 : vector<64x16xf32> to vector<64x16xbf16>
    %26 = arith.mulf %1, %2 : vector<4x16x16xf32>
    %27 = vector.shape_cast %26 : vector<4x16x16xf32> to vector<64x16xf32>
    %28 = arith.truncf %27 : vector<64x16xf32> to vector<64x16xbf16>
    %cst_12 = arith.constant dense<0.000000e+00> : vector<64x16xf32>
    %29 = tpu.matmul %28, %0, %cst_12 {dimension_numbers = #tpu.dot_dimension_numbers<[1], [0], [0], [1], [0, 0, 1, 1], [], []>} : vector<64x16xbf16>, vector<16x16xbf16>, vector<64x16xf32> -> vector<64x16xf32>
    %30 = arith.truncf %29 : vector<64x16xf32> to vector<64x16xbf16>
    %cst_13 = arith.constant 0.000000e+00 : f32
    %31 = vector.broadcast %cst_13 : f32 to vector<16x16xf32>
    %32 = vector.extract_strided_slice %11 {offsets = [0, 0], sizes = [16, 16], strides = [1, 1]} : vector<64x16xbf16> to vector<16x16xbf16>
    %cst_14 = arith.constant dense<0.000000e+00> : vector<16x16xf32>
    %33 = tpu.matmul %0, %32, %cst_14 {dimension_numbers = #tpu.dot_dimension_numbers<[1], [0], [0], [1], [0, 0, 1, 1], [], []>} : vector<16x16xbf16>, vector<16x16xbf16>, vector<16x16xf32> -> vector<16x16xf32>
    %34 = vector.extract_strided_slice %15 {offsets = [0, 0], sizes = [16, 16], strides = [1, 1]} : vector<64x16xbf16> to vector<16x16xbf16>
    %cst_15 = arith.constant dense<0.000000e+00> : vector<16x16xf32>
    %35 = tpu.matmul %0, %34, %cst_15 {dimension_numbers = #tpu.dot_dimension_numbers<[1], [0], [0], [1], [0, 0, 1, 1], [], []>} : vector<16x16xbf16>, vector<16x16xbf16>, vector<16x16xf32> -> vector<16x16xf32>
    %36 = vector.extract_strided_slice %20 {offsets = [0, 0], sizes = [16, 16], strides = [1, 1]} : vector<64x16xbf16> to vector<16x16xbf16>
    %cst_16 = arith.constant dense<0.000000e+00> : vector<16x16xf32>
    %37 = tpu.matmul %0, %36, %cst_16 {dimension_numbers = #tpu.dot_dimension_numbers<[1], [0], [0], [1], [0, 0, 1, 1], [], []>} : vector<16x16xbf16>, vector<16x16xbf16>, vector<16x16xf32> -> vector<16x16xf32>
    %38 = vector.extract_strided_slice %25 {offsets = [0, 0], sizes = [16, 16], strides = [1, 1]} : vector<64x16xbf16> to vector<16x16xbf16>
    %cst_17 = arith.constant dense<0.000000e+00> : vector<16x16xf32>
    %39 = tpu.matmul %0, %38, %cst_17 {dimension_numbers = #tpu.dot_dimension_numbers<[1], [0], [0], [1], [0, 0, 1, 1], [], []>} : vector<16x16xbf16>, vector<16x16xbf16>, vector<16x16xf32> -> vector<16x16xf32>
    %40 = vector.extract_strided_slice %30 {offsets = [0, 0], sizes = [16, 16], strides = [1, 1]} : vector<64x16xbf16> to vector<16x16xbf16>
    %cst_18 = arith.constant dense<0.000000e+00> : vector<16x16xf32>
    %41 = tpu.matmul %0, %40, %cst_18 {dimension_numbers = #tpu.dot_dimension_numbers<[1], [0], [0], [1], [0, 0, 1, 1], [], []>} : vector<16x16xbf16>, vector<16x16xbf16>, vector<16x16xf32> -> vector<16x16xf32>
    %42 = arith.mulf %33, %33 : vector<16x16xf32>
    %43 = arith.mulf %35, %35 : vector<16x16xf32>
    %44 = arith.mulf %33, %35 : vector<16x16xf32>
    %45 = arith.subf %37, %42 : vector<16x16xf32>
    %46 = arith.subf %39, %43 : vector<16x16xf32>
    %47 = arith.subf %41, %44 : vector<16x16xf32>
    %cst_19 = arith.constant 2.000000e+00 : f32
    %48 = vector.broadcast %cst_19 : f32 to vector<16x16xf32>
    %49 = arith.mulf %48, %44 : vector<16x16xf32>
    %cst_20 = arith.constant 9.99999974E-5 : f32
    %50 = vector.broadcast %cst_20 : f32 to vector<16x16xf32>
    %51 = arith.addf %49, %50 : vector<16x16xf32>
    %cst_21 = arith.constant 2.000000e+00 : f32
    %52 = vector.broadcast %cst_21 : f32 to vector<16x16xf32>
    %53 = arith.mulf %52, %47 : vector<16x16xf32>
    %cst_22 = arith.constant 8.99999984E-4 : f32
    %54 = vector.broadcast %cst_22 : f32 to vector<16x16xf32>
    %55 = arith.addf %53, %54 : vector<16x16xf32>
    %56 = arith.mulf %51, %55 : vector<16x16xf32>
    %57 = arith.addf %42, %43 : vector<16x16xf32>
    %cst_23 = arith.constant 9.99999974E-5 : f32
    %58 = vector.broadcast %cst_23 : f32 to vector<16x16xf32>
    %59 = arith.addf %57, %58 : vector<16x16xf32>
    %60 = arith.addf %45, %46 : vector<16x16xf32>
    %cst_24 = arith.constant 8.99999984E-4 : f32
    %61 = vector.broadcast %cst_24 : f32 to vector<16x16xf32>
    %62 = arith.addf %60, %61 : vector<16x16xf32>
    %63 = arith.mulf %59, %62 : vector<16x16xf32>
    %64 = tpu.reciprocal %63 {approx = true} : vector<16x16xf32> -> vector<16x16xf32>
    %65 = arith.mulf %56, %64 : vector<16x16xf32>
    %66 = arith.addf %31, %65 : vector<16x16xf32>
    %67 = vector.extract_strided_slice %11 {offsets = [16, 0], sizes = [16, 16], strides = [1, 1]} : vector<64x16xbf16> to vector<16x16xbf16>
    %cst_25 = arith.constant dense<0.000000e+00> : vector<16x16xf32>
    %68 = tpu.matmul %0, %67, %cst_25 {dimension_numbers = #tpu.dot_dimension_numbers<[1], [0], [0], [1], [0, 0, 1, 1], [], []>} : vector<16x16xbf16>, vector<16x16xbf16>, vector<16x16xf32> -> vector<16x16xf32>
    %69 = vector.extract_strided_slice %15 {offsets = [16, 0], sizes = [16, 16], strides = [1, 1]} : vector<64x16xbf16> to vector<16x16xbf16>
    %cst_26 = arith.constant dense<0.000000e+00> : vector<16x16xf32>
    %70 = tpu.matmul %0, %69, %cst_26 {dimension_numbers = #tpu.dot_dimension_numbers<[1], [0], [0], [1], [0, 0, 1, 1], [], []>} : vector<16x16xbf16>, vector<16x16xbf16>, vector<16x16xf32> -> vector<16x16xf32>
    %71 = vector.extract_strided_slice %20 {offsets = [16, 0], sizes = [16, 16], strides = [1, 1]} : vector<64x16xbf16> to vector<16x16xbf16>
    %cst_27 = arith.constant dense<0.000000e+00> : vector<16x16xf32>
    %72 = tpu.matmul %0, %71, %cst_27 {dimension_numbers = #tpu.dot_dimension_numbers<[1], [0], [0], [1], [0, 0, 1, 1], [], []>} : vector<16x16xbf16>, vector<16x16xbf16>, vector<16x16xf32> -> vector<16x16xf32>
    %73 = vector.extract_strided_slice %25 {offsets = [16, 0], sizes = [16, 16], strides = [1, 1]} : vector<64x16xbf16> to vector<16x16xbf16>
    %cst_28 = arith.constant dense<0.000000e+00> : vector<16x16xf32>
    %74 = tpu.matmul %0, %73, %cst_28 {dimension_numbers = #tpu.dot_dimension_numbers<[1], [0], [0], [1], [0, 0, 1, 1], [], []>} : vector<16x16xbf16>, vector<16x16xbf16>, vector<16x16xf32> -> vector<16x16xf32>
    %75 = vector.extract_strided_slice %30 {offsets = [16, 0], sizes = [16, 16], strides = [1, 1]} : vector<64x16xbf16> to vector<16x16xbf16>
    %cst_29 = arith.constant dense<0.000000e+00> : vector<16x16xf32>
    %76 = tpu.matmul %0, %75, %cst_29 {dimension_numbers = #tpu.dot_dimension_numbers<[1], [0], [0], [1], [0, 0, 1, 1], [], []>} : vector<16x16xbf16>, vector<16x16xbf16>, vector<16x16xf32> -> vector<16x16xf32>
    %77 = arith.mulf %68, %68 : vector<16x16xf32>
    %78 = arith.mulf %70, %70 : vector<16x16xf32>
    %79 = arith.mulf %68, %70 : vector<16x16xf32>
    %80 = arith.subf %72, %77 : vector<16x16xf32>
    %81 = arith.subf %74, %78 : vector<16x16xf32>
    %82 = arith.subf %76, %79 : vector<16x16xf32>
    %cst_30 = arith.constant 2.000000e+00 : f32
    %83 = vector.broadcast %cst_30 : f32 to vector<16x16xf32>
    %84 = arith.mulf %83, %79 : vector<16x16xf32>
    %cst_31 = arith.constant 9.99999974E-5 : f32
    %85 = vector.broadcast %cst_31 : f32 to vector<16x16xf32>
    %86 = arith.addf %84, %85 : vector<16x16xf32>
    %cst_32 = arith.constant 2.000000e+00 : f32
    %87 = vector.broadcast %cst_32 : f32 to vector<16x16xf32>
    %88 = arith.mulf %87, %82 : vector<16x16xf32>
    %cst_33 = arith.constant 8.99999984E-4 : f32
    %89 = vector.broadcast %cst_33 : f32 to vector<16x16xf32>
    %90 = arith.addf %88, %89 : vector<16x16xf32>
    %91 = arith.mulf %86, %90 : vector<16x16xf32>
    %92 = arith.addf %77, %78 : vector<16x16xf32>
    %cst_34 = arith.constant 9.99999974E-5 : f32
    %93 = vector.broadcast %cst_34 : f32 to vector<16x16xf32>
    %94 = arith.addf %92, %93 : vector<16x16xf32>
    %95 = arith.addf %80, %81 : vector<16x16xf32>
    %cst_35 = arith.constant 8.99999984E-4 : f32
    %96 = vector.broadcast %cst_35 : f32 to vector<16x16xf32>
    %97 = arith.addf %95, %96 : vector<16x16xf32>
    %98 = arith.mulf %94, %97 : vector<16x16xf32>
    %99 = tpu.reciprocal %98 {approx = true} : vector<16x16xf32> -> vector<16x16xf32>
    %100 = arith.mulf %91, %99 : vector<16x16xf32>
    %101 = arith.addf %66, %100 : vector<16x16xf32>
    %102 = vector.extract_strided_slice %11 {offsets = [32, 0], sizes = [16, 16], strides = [1, 1]} : vector<64x16xbf16> to vector<16x16xbf16>
    %cst_36 = arith.constant dense<0.000000e+00> : vector<16x16xf32>
    %103 = tpu.matmul %0, %102, %cst_36 {dimension_numbers = #tpu.dot_dimension_numbers<[1], [0], [0], [1], [0, 0, 1, 1], [], []>} : vector<16x16xbf16>, vector<16x16xbf16>, vector<16x16xf32> -> vector<16x16xf32>
    %104 = vector.extract_strided_slice %15 {offsets = [32, 0], sizes = [16, 16], strides = [1, 1]} : vector<64x16xbf16> to vector<16x16xbf16>
    %cst_37 = arith.constant dense<0.000000e+00> : vector<16x16xf32>
    %105 = tpu.matmul %0, %104, %cst_37 {dimension_numbers = #tpu.dot_dimension_numbers<[1], [0], [0], [1], [0, 0, 1, 1], [], []>} : vector<16x16xbf16>, vector<16x16xbf16>, vector<16x16xf32> -> vector<16x16xf32>
    %106 = vector.extract_strided_slice %20 {offsets = [32, 0], sizes = [16, 16], strides = [1, 1]} : vector<64x16xbf16> to vector<16x16xbf16>
    %cst_38 = arith.constant dense<0.000000e+00> : vector<16x16xf32>
    %107 = tpu.matmul %0, %106, %cst_38 {dimension_numbers = #tpu.dot_dimension_numbers<[1], [0], [0], [1], [0, 0, 1, 1], [], []>} : vector<16x16xbf16>, vector<16x16xbf16>, vector<16x16xf32> -> vector<16x16xf32>
    %108 = vector.extract_strided_slice %25 {offsets = [32, 0], sizes = [16, 16], strides = [1, 1]} : vector<64x16xbf16> to vector<16x16xbf16>
    %cst_39 = arith.constant dense<0.000000e+00> : vector<16x16xf32>
    %109 = tpu.matmul %0, %108, %cst_39 {dimension_numbers = #tpu.dot_dimension_numbers<[1], [0], [0], [1], [0, 0, 1, 1], [], []>} : vector<16x16xbf16>, vector<16x16xbf16>, vector<16x16xf32> -> vector<16x16xf32>
    %110 = vector.extract_strided_slice %30 {offsets = [32, 0], sizes = [16, 16], strides = [1, 1]} : vector<64x16xbf16> to vector<16x16xbf16>
    %cst_40 = arith.constant dense<0.000000e+00> : vector<16x16xf32>
    %111 = tpu.matmul %0, %110, %cst_40 {dimension_numbers = #tpu.dot_dimension_numbers<[1], [0], [0], [1], [0, 0, 1, 1], [], []>} : vector<16x16xbf16>, vector<16x16xbf16>, vector<16x16xf32> -> vector<16x16xf32>
    %112 = arith.mulf %103, %103 : vector<16x16xf32>
    %113 = arith.mulf %105, %105 : vector<16x16xf32>
    %114 = arith.mulf %103, %105 : vector<16x16xf32>
    %115 = arith.subf %107, %112 : vector<16x16xf32>
    %116 = arith.subf %109, %113 : vector<16x16xf32>
    %117 = arith.subf %111, %114 : vector<16x16xf32>
    %cst_41 = arith.constant 2.000000e+00 : f32
    %118 = vector.broadcast %cst_41 : f32 to vector<16x16xf32>
    %119 = arith.mulf %118, %114 : vector<16x16xf32>
    %cst_42 = arith.constant 9.99999974E-5 : f32
    %120 = vector.broadcast %cst_42 : f32 to vector<16x16xf32>
    %121 = arith.addf %119, %120 : vector<16x16xf32>
    %cst_43 = arith.constant 2.000000e+00 : f32
    %122 = vector.broadcast %cst_43 : f32 to vector<16x16xf32>
    %123 = arith.mulf %122, %117 : vector<16x16xf32>
    %cst_44 = arith.constant 8.99999984E-4 : f32
    %124 = vector.broadcast %cst_44 : f32 to vector<16x16xf32>
    %125 = arith.addf %123, %124 : vector<16x16xf32>
    %126 = arith.mulf %121, %125 : vector<16x16xf32>
    %127 = arith.addf %112, %113 : vector<16x16xf32>
    %cst_45 = arith.constant 9.99999974E-5 : f32
    %128 = vector.broadcast %cst_45 : f32 to vector<16x16xf32>
    %129 = arith.addf %127, %128 : vector<16x16xf32>
    %130 = arith.addf %115, %116 : vector<16x16xf32>
    %cst_46 = arith.constant 8.99999984E-4 : f32
    %131 = vector.broadcast %cst_46 : f32 to vector<16x16xf32>
    %132 = arith.addf %130, %131 : vector<16x16xf32>
    %133 = arith.mulf %129, %132 : vector<16x16xf32>
    %134 = tpu.reciprocal %133 {approx = true} : vector<16x16xf32> -> vector<16x16xf32>
    %135 = arith.mulf %126, %134 : vector<16x16xf32>
    %136 = arith.addf %101, %135 : vector<16x16xf32>
    %137 = vector.extract_strided_slice %11 {offsets = [48, 0], sizes = [16, 16], strides = [1, 1]} : vector<64x16xbf16> to vector<16x16xbf16>
    %cst_47 = arith.constant dense<0.000000e+00> : vector<16x16xf32>
    %138 = tpu.matmul %0, %137, %cst_47 {dimension_numbers = #tpu.dot_dimension_numbers<[1], [0], [0], [1], [0, 0, 1, 1], [], []>} : vector<16x16xbf16>, vector<16x16xbf16>, vector<16x16xf32> -> vector<16x16xf32>
    %139 = vector.extract_strided_slice %15 {offsets = [48, 0], sizes = [16, 16], strides = [1, 1]} : vector<64x16xbf16> to vector<16x16xbf16>
    %cst_48 = arith.constant dense<0.000000e+00> : vector<16x16xf32>
    %140 = tpu.matmul %0, %139, %cst_48 {dimension_numbers = #tpu.dot_dimension_numbers<[1], [0], [0], [1], [0, 0, 1, 1], [], []>} : vector<16x16xbf16>, vector<16x16xbf16>, vector<16x16xf32> -> vector<16x16xf32>
    %141 = vector.extract_strided_slice %20 {offsets = [48, 0], sizes = [16, 16], strides = [1, 1]} : vector<64x16xbf16> to vector<16x16xbf16>
    %cst_49 = arith.constant dense<0.000000e+00> : vector<16x16xf32>
    %142 = tpu.matmul %0, %141, %cst_49 {dimension_numbers = #tpu.dot_dimension_numbers<[1], [0], [0], [1], [0, 0, 1, 1], [], []>} : vector<16x16xbf16>, vector<16x16xbf16>, vector<16x16xf32> -> vector<16x16xf32>
    %143 = vector.extract_strided_slice %25 {offsets = [48, 0], sizes = [16, 16], strides = [1, 1]} : vector<64x16xbf16> to vector<16x16xbf16>
    %cst_50 = arith.constant dense<0.000000e+00> : vector<16x16xf32>
    %144 = tpu.matmul %0, %143, %cst_50 {dimension_numbers = #tpu.dot_dimension_numbers<[1], [0], [0], [1], [0, 0, 1, 1], [], []>} : vector<16x16xbf16>, vector<16x16xbf16>, vector<16x16xf32> -> vector<16x16xf32>
    %145 = vector.extract_strided_slice %30 {offsets = [48, 0], sizes = [16, 16], strides = [1, 1]} : vector<64x16xbf16> to vector<16x16xbf16>
    %cst_51 = arith.constant dense<0.000000e+00> : vector<16x16xf32>
    %146 = tpu.matmul %0, %145, %cst_51 {dimension_numbers = #tpu.dot_dimension_numbers<[1], [0], [0], [1], [0, 0, 1, 1], [], []>} : vector<16x16xbf16>, vector<16x16xbf16>, vector<16x16xf32> -> vector<16x16xf32>
    %147 = arith.mulf %138, %138 : vector<16x16xf32>
    %148 = arith.mulf %140, %140 : vector<16x16xf32>
    %149 = arith.mulf %138, %140 : vector<16x16xf32>
    %150 = arith.subf %142, %147 : vector<16x16xf32>
    %151 = arith.subf %144, %148 : vector<16x16xf32>
    %152 = arith.subf %146, %149 : vector<16x16xf32>
    %cst_52 = arith.constant 2.000000e+00 : f32
    %153 = vector.broadcast %cst_52 : f32 to vector<16x16xf32>
    %154 = arith.mulf %153, %149 : vector<16x16xf32>
    %cst_53 = arith.constant 9.99999974E-5 : f32
    %155 = vector.broadcast %cst_53 : f32 to vector<16x16xf32>
    %156 = arith.addf %154, %155 : vector<16x16xf32>
    %cst_54 = arith.constant 2.000000e+00 : f32
    %157 = vector.broadcast %cst_54 : f32 to vector<16x16xf32>
    %158 = arith.mulf %157, %152 : vector<16x16xf32>
    %cst_55 = arith.constant 8.99999984E-4 : f32
    %159 = vector.broadcast %cst_55 : f32 to vector<16x16xf32>
    %160 = arith.addf %158, %159 : vector<16x16xf32>
    %161 = arith.mulf %156, %160 : vector<16x16xf32>
    %162 = arith.addf %147, %148 : vector<16x16xf32>
    %cst_56 = arith.constant 9.99999974E-5 : f32
    %163 = vector.broadcast %cst_56 : f32 to vector<16x16xf32>
    %164 = arith.addf %162, %163 : vector<16x16xf32>
    %165 = arith.addf %150, %151 : vector<16x16xf32>
    %cst_57 = arith.constant 8.99999984E-4 : f32
    %166 = vector.broadcast %cst_57 : f32 to vector<16x16xf32>
    %167 = arith.addf %165, %166 : vector<16x16xf32>
    %168 = arith.mulf %164, %167 : vector<16x16xf32>
    %169 = tpu.reciprocal %168 {approx = true} : vector<16x16xf32> -> vector<16x16xf32>
    %170 = arith.mulf %161, %169 : vector<16x16xf32>
    %171 = arith.addf %136, %170 : vector<16x16xf32>
    %cst_58 = arith.constant dense<0.000000e+00> : vector<16xf32>
    %172 = vector.multi_reduction <add>, %171, %cst_58 [0] : vector<16x16xf32> to vector<16xf32>
    %173 = vector.shape_cast %172 : vector<16xf32> to vector<1x16xf32>
    %174 = vector.shape_cast %173 : vector<1x16xf32> to vector<1x1x16xf32>
    %c0_59 = arith.constant 0 : index
    %c0_60 = arith.constant 0 : index
    %c0_61 = arith.constant 0 : index
    %175 = vector.load %arg4[%c0_59, %c0_60, %c0_61] : memref<1x1x16xf32, #tpu.memory_space<vmem>>, vector<1x1x16xf32>
    tpu.vector_store %arg4[%c0_59, %c0_60, %c0_61], %174 {strides = array<i32>} : memref<1x1x16xf32, #tpu.memory_space<vmem>>, vector<1x1x16xf32>,
    %176 = vector.shape_cast %7 : vector<1x16xf32> to vector<1x1x16xf32>
    %c0_62 = arith.constant 0 : index
    %c0_63 = arith.constant 0 : index
    %c0_64 = arith.constant 0 : index
    %177 = vector.load %arg5[%c0_62, %c0_63, %c0_64] : memref<1x1x16xf32, #tpu.memory_space<vmem>>, vector<1x1x16xf32>
    tpu.vector_store %arg5[%c0_62, %c0_63, %c0_64], %176 {strides = array<i32>} : memref<1x1x16xf32, #tpu.memory_space<vmem>>, vector<1x1x16xf32>,
    return
  }
  func.func @transform_0(%arg0: i32) -> (i32, i32, i32) {
    %c0_i32 = arith.constant 0 : i32
    %c0_i32_0 = arith.constant 0 : i32
    %c0_i32_1 = arith.constant 0 : i32
    return %arg0, %c0_i32, %c0_i32_0 : i32, i32, i32
  }
  func.func @transform_1(%arg0: i32) -> (i32, i32, i32) {
    %c0_i32 = arith.constant 0 : i32
    %c0_i32_0 = arith.constant 0 : i32
    %c0_i32_1 = arith.constant 0 : i32
    return %arg0, %c0_i32, %c0_i32_0 : i32, i32, i32
  }
  func.func @transform_2(%arg0: i32) -> (i32, i32) {
    %c0_i32 = arith.constant 0 : i32
    %c0_i32_0 = arith.constant 0 : i32
    %c0_i32_1 = arith.constant 0 : i32
    return %c0_i32, %c0_i32_0 : i32, i32
  }
  func.func @transform_3(%arg0: i32) -> (i32, i32, i32) {
    %c0_i32 = arith.constant 0 : i32
    %c0_i32_0 = arith.constant 0 : i32
    %c0_i32_1 = arith.constant 0 : i32
    return %arg0, %c0_i32, %c0_i32_0 : i32, i32, i32
  }
  func.func @transform_4(%arg0: i32) -> (i32, i32, i32) {
    %c0_i32 = arith.constant 0 : i32
    %c0_i32_0 = arith.constant 0 : i32
    %c0_i32_1 = arith.constant 0 : i32
    return %arg0, %c0_i32, %c0_i32_0 : i32, i32, i32
  }
}

</mosaic_0001>

<bundles_post_ra>
// kernel: pix2pix_loss.1
= control target key start
LH: loop header
LB: loop body
LE: loop exit
PB: predicated region body
PF: predicated region fallthrough
CT: control target
= control target key end

     0   :  { %10 = vsyncpa [#allocation3], 0  ;;  %s2903_s0 = inlined_call_operand.hbm [shape: f32[8,16,16], index: 0, kind: input, shape index: {}]   ;;  %s2904_s1 = inlined_call_operand.hbm [shape: f32[8,16,16], index: 1, kind: input, shape index: {}]   ;;  %s2905_s2 = inlined_call_operand.vmem [shape: bf16[16,16], index: 2, kind: input, shape index: {}]   ;;  %s2906_s3 = inlined_call_operand.vmem [shape: f32[2,1,16], index: 3, kind: output, shape index: {0}]   ;;  %s2907_s4 = inlined_call_operand.vmem [shape: f32[2,1,16], index: 4, kind: output, shape index: {1}]  }
   0x1   :  { %12 = vsyncpa [#allocation3 + $0x1], 0 }
   0x2   :  { %13 = vsyncpa [#allocation5], 0 }
   0x3   :  { %15 = vsyncpa [#allocation5 + $0x1], 0  ;;  %s2367_s15 = smov 0   ;;  %s2369_s16 = smov 0  }
   0x4   :  { %s2371_s17 = smov 0   ;;  %s2373_s18 = smov 0  }
   0x5 LB: > { %s2386_s19 = sadd.s32 4294967295, %s2334_s18   ;;  %s2389_s20 = sadd.s32 1, %s2334_s18   ;;  %s2334_s18 = sphi %s2373_s18, %s2917_s18   ;;  %s2330_s17 = sphi %s2371_s17, %s2916_s17   ;;  %s2326_s16 = sphi %s2369_s16, %s2915_s16   ;;  %s2322_s15 = sphi %s2367_s15, %s2914_s15  }
   0x6   : > { %s25_s21 = ssub.s32 %s2334_s18, %s2389_s20  ;;  %s28_s22 = sadd.s32 1, %s2330_s17 }
   0x7   : > { %p26_p0 = scmp.eq.s32.totalorder %s25_s21, 0  ;;  %p35_p1 = scmp.ne.s32.totalorder %s2330_s17, %s2326_s16 }
   0x8   : > { %p36_p2 = scmp.eq.s32.totalorder %s2334_s18, 0  ;;  %p41_p3 = scmp.ne.s32.totalorder %s2326_s16, %s2322_s15 }
   0x9   : > { %s2399_s23 = scalar_select %p26_p0, %s2330_s17, %s28_s22  }
   0xa   : > { %p37_p4 = por %p36_p2, %p35_p1  ;;  %p42_p5 = scmp.eq.s32.totalorder %s2386_s19, 0 }
   0xb   : > { %p2182_p6 = scmp.lt.s32.totalorder %s2334_s18, 2  ;;  %s2408_s25 = sand.u32 1, %s2330_s17  }
   0xc   : > { %p2403_p7 = por %p42_p5, %p41_p3  ;;  %s1878_s26 = sshll.u32 %s2408_s25, 6 }
   0xd   : > { %s1933_s27 = sshll.u32 %s2334_s18, 10  ;;  %s171_s5 = scalar_lea.vmem [#allocation2], %s1878_s26 }
   0xe   : > { %s2909_s24 = scalar_select %p2403_p7, 1, 0 }
   0xf   : > { %s2417_s30 = scalar_lea.hbm %s2903_s0, %s1933_s27  ;;  %s179_s6 = sshll.u32 %s171_s5, 4  ;;  %s2421_s6 = int_to_ptr.vmem [resolvable:$true] %s179_s6 }
  0x10   : > { %p2423_p8 = pnand %p2182_p6, %p37_p4  ;;  %s168_s8 = scalar_lea.sflag [#allocation3], %s2408_s25 }
  0x11   : > { %s2236_s9 = scalar_lea.hbm %s2417_s30, 1024  ;;  %s2241_s12 = scalar_lea.hbm %s2903_s0, 2048 }
  0x12   : > { %p2237_p10 = scmp.ne.s32.totalorder %s2417_s30, %s2236_s9  ;;  %p2238_p11 = pneg %p2423_p8 }
  0x13   : > { %p2242_p0 = scmp.lt.u32.totalorder %s2417_s30, %s2903_s0  ;;  %p2243_p1 = scmp.lt.u32.totalorder %s2241_s12, %s2236_s9 }
  0x14   : > { %p2239_p12 = pnand %p2238_p11, %p2237_p10  ;;  %p2245_p3 = scmp.lt.u32.totalorder %s2236_s9, %s2417_s30 }
  0x15   : > { %p2244_p2 = por %p2243_p1, %p2242_p0 }
  0x16   : > { %p2240_p13 = pneg %p2239_p12 }
  0x17   : > { %p2246_p4 = por %p2245_p3, %p2244_p2 }
  0x19   : > { %p2247_p5 = pnand %p2246_p4, %p2240_p13 }
  0x1b   : > { %2250 = shalt.err (!%p2247_p5)
}
  0x1c   : > { %s2251_s15 = scalar_lea.vmem %s2421_s6, 1024  ;;  %s2336_s21 = smov [#allocation2]  }
  0x1d   : > { %p2252_p6 = scmp.ne.s32.totalorder %s2421_s6, %s2251_s15  ;;  %s2256_s22 = sshll.u32 %s2336_s21, 4  ;;  %s2257_s22 = int_to_ptr.vmem [resolvable:$false] %s2256_s22 }
  0x1e   : > { %s2258_s28 = scalar_lea.vmem %s2257_s22, 2048  ;;  %p2259_p9 = scmp.lt.s32.totalorder %s2421_s6, %s2257_s22 }
  0x1f   : > { %p2254_p10 = pnand %p2252_p6, %p2238_p11  ;;  %p2260_p0 = scmp.lt.s32.totalorder %s2258_s28, %s2251_s15 }
  0x21   : > { %p2255_p12 = pneg %p2254_p10  ;;  %p2261_p1 = por %p2260_p0, %p2259_p9 }
  0x23   : > { %p2262_p2 = pnand %p2261_p1, %p2255_p12 }
  0x25   : > { %2265 = shalt.err (!%p2262_p2)
}
  0x26   : > { %s2337_s29 = smov 128   ;;  %s2338_s5 = smov 8  }
  0x27   : > { %2178 = dma.hbm_to_vmem [thread:$0]  (!%p2423_p8), %s2417_s30, 1024, %s2421_s6, %s168_s8, %s2337_s29, %s2337_s29, %s2338_s5  }
  0x28   : > { %p209_p9 = scmp.lt.s32.totalorder %s2334_s18, 3  ;;  %s2465_s11 = scalar_lea.hbm %s2904_s1, %s1933_s27 }
  0x29   : > { %p2911_p13 = scmp.ge.s32.totalorder %s2334_s18, 1  ;;  %s193_s13 = scalar_lea.vmem [#allocation4], %s1878_s26 }
  0x2a   : > { %s201_s14 = sshll.u32 %s193_s13, 4  ;;  %s190_s30 = scalar_lea.sflag [#allocation5], %s2408_s25  ;;  %s2475_s14 = int_to_ptr.vmem [resolvable:$true] %s201_s14 }
  0x2b   : > { %p2469_p3 = pnand %p2911_p13, %p209_p9  ;;  %s2266_s6 = scalar_lea.hbm %s2465_s11, 1024 }
  0x2c   : > { %p2267_p4 = scmp.ne.s32.totalorder %s2465_s11, %s2266_s6  ;;  %s2271_s8 = scalar_lea.hbm %s2904_s1, 2048 }
  0x2d   : > { %p2272_p10 = scmp.lt.u32.totalorder %s2465_s11, %s2904_s1  ;;  %p2273_p12 = scmp.lt.u32.totalorder %s2271_s8, %s2266_s6 }
  0x2e   : > { %p2269_p5 = pnand %p2267_p4, %p2238_p11  ;;  %p2275_p1 = scmp.lt.u32.totalorder %s2266_s6, %s2465_s11 }
  0x2f   : > { %p2274_p0 = por %p2273_p12, %p2272_p10 }
  0x30   : > { %p2270_p6 = pneg %p2269_p5 }
  0x31   : > { %p2276_p2 = por %p2275_p1, %p2274_p0 }
  0x33   : > { %p2277_p9 = pnand %p2276_p2, %p2270_p6 }
  0x35   : > { %2280 = shalt.err (!%p2277_p9)
}
  0x36   : > { %s2281_s26 = scalar_lea.vmem %s2475_s14, 1024  ;;  %s2339_s22 = smov [#allocation4]  }
  0x37   : > { %p2282_p13 = scmp.ne.s32.totalorder %s2475_s14, %s2281_s26  ;;  %s2286_s28 = sshll.u32 %s2339_s22, 4  ;;  %s2287_s28 = int_to_ptr.vmem [resolvable:$false] %s2286_s28 }
  0x38   : > { %s2288_s9 = scalar_lea.vmem %s2287_s28, 2048  ;;  %p2289_p7 = scmp.lt.s32.totalorder %s2475_s14, %s2287_s28 }
  0x39   : > { %p2284_p4 = pnand %p2282_p13, %p2238_p11  ;;  %p2290_p10 = scmp.lt.s32.totalorder %s2288_s9, %s2281_s26 }
  0x3b   : > { %p2285_p5 = pneg %p2284_p4  ;;  %p2291_p12 = por %p2290_p10, %p2289_p7 }
  0x3d   : > { %p2292_p0 = pnand %p2291_p12, %p2285_p5 }
  0x3f   : > { %2295 = shalt.err (!%p2292_p0)
}
  0x40   : > { %2181 = dma.hbm_to_vmem [thread:$0]  (!%p2423_p8), %s2465_s11, 1024, %s2475_s14, %s190_s30, %s2337_s29, %s2337_s29, %s2338_s5  }
  0x41   : > { %213 = sbr.rel (%p2469_p3) target bundleno = 641 (0x281), region = 32  ;;  %s215_s10 = sand.u32 (!%p2469_p3), 1, %s2326_s16  }
  0x42   : > { %s1887_s13 = sshll.u32 (!%p2469_p3), %s215_s10, 6  ;;  %s216_s6 = scalar_lea.sflag (!%p2469_p3), [#allocation3], %s215_s10 }
  0x43   : > { %s2509_s18 = scalar_lea.vmem (!%p2469_p3), [#allocation2], %s1887_s13  ;;  %p2913_p7 = scmp.ne.s32.totalorder (!%p2469_p3), %s2909_s24, 0 }
  0x48   : > { %2313 = dma.done.wait (%p2913_p7), %s216_s6, 1024  }
  0x49   : > { %2315 = vsyncadd (%p2913_p7), %s216_s6, 4294966272  ;;  %s225_s25 = scalar_lea.sflag [#allocation5], %s215_s10  ;;  %s2515_s7 = scalar_lea.vmem [#allocation4], %s1887_s13 }
  0x4a   : > { %2317 = dma.done.wait (%p2913_p7), %s225_s25, 1024  }
  0x4b   : > { %2319 = vsyncadd (%p2913_p7), %s225_s25, 4294966272  ;;  %v2524_v0 = vld [vmem:[%s2905_s2] sm:$0xff]   ;;  %v2530_v2 = vld [vmem:[%s2509_s18 + $0x8] sm:$0xff]  ;;  %vm302_vm0 = vcmask 130048   ;;  %p261_p8 = scmp.lt.s32.totalorder %s2386_s19, 1  ;;  %vm1765_vm1 = vcmask 122880  }
  0x4c   : > { %v2527_v1 = vld [vmem:[%s2509_s18] sm:$0xff]  ;;  %2001 = vmatprep.subr.bf16.mxu0 %v2524_v0  ;;  %2011 = vmatprep.subr.bf16.mxu1 %v2524_v0  ;;  %v2540_v5 = vld [vmem:[%s2515_s7 + $0x8] sm:$0xff]  ;;  %v2545_v7 = vld [vmem:[%s2509_s18 + $0x10] sm:$0xff]  ;;  %v503_v48 = vmul.f32 %v2530_v2, %v2530_v2  ;;  %vm2341_vm2 = vmmov 0  }
  0x4d   : > { %v2533_v3 = vld [vmem:[%s2515_s7] sm:$0xff]  ;;  %v326_v4 = vpack.c.bf16 %v2530_v2, %v2527_v1  ;;  %v2548_v8 = vld [vmem:[%s2509_s18 + $0x18] sm:$0xff]  ;;  %2002 = vmatpush3.bf16.msra.mxu0 %v2524_v0  ;;  %2012 = vmatpush3.bf16.msra.mxu1 %v2524_v0  ;;  %v287_v9 = vsub.f32 %v2530_v2, %v2540_v5  ;;  %v2559_v12 = vld [vmem:[%s2515_s7 + $0x10] sm:$0xff]  ;;  %v502_v27 = vmul.f32 %v2527_v1, %v2527_v1  ;;  %s2919_s19 = smov (!%p261_p8, %s2386_s19), 1 }
  0x4e   : > { %v286_v6 = vsub.f32 %v2527_v1, %v2533_v3  ;;  %v417_v10 = vpack.c.bf16 %v2540_v5, %v2533_v3  ;;  %v327_v11 = vpack.c.bf16 %v2548_v8, %v2545_v7  ;;  %v2562_v13 = vld [vmem:[%s2515_s7 + $0x18] sm:$0xff]  ;;  %v288_v15 = vsub.f32 %v2545_v7, %v2559_v12  ;;  %2021 = vmatprep.subr.bf16.mxu0 %v2524_v0  ;;  %v2569_v16 = vld [vmem:[%s2509_s18 + $0x20] sm:$0xff]  ;;  %v2572_v17 = vld [vmem:[%s2509_s18 + $0x28] sm:$0xff]  ;;  %s266_s12 = scalar_lea.vmem %s2907_s4, %s2919_s19  ;;  %s263_s27 = scalar_lea.vmem %s2906_s3, %s2919_s19 }
  0x4f   : > { %2003 = vmatprep.mubr.msk.bf16.mxu0 %vm302_vm0, %v326_v4  ;;  %v295_v18 = vand.u32 2147483647, %v287_v9  ;;  %v289_v19 = vsub.f32 %v2548_v8, %v2562_v13  ;;  %v418_v20 = vpack.c.bf16 %v2562_v13, %v2559_v12  ;;  %v2580_v21 = vld [vmem:[%s2515_s7 + $0x20] sm:$0xff]  ;;  %v2583_v22 = vld [vmem:[%s2515_s7 + $0x28] sm:$0xff]  ;;  %2031 = vmatprep.subr.bf16.mxu1 %v2524_v0  ;;  %v2589_v25 = vld [vmem:[%s2509_s18 + $0x30] sm:$0xff]  ;;  %v504_v29 = vmul.f32 %v2545_v7, %v2545_v7 }
  0x50   : > { %v294_v14 = vand.u32 2147483647, %v286_v6  ;;  %2013 = vmatprep.mubr.msk.bf16.mxu1 %vm302_vm0, %v417_v10  ;;  %2004 = vmatmul.mubr.msk.bf16.vlgmr.msra.gmra.mrb[0].mxu0 %vm302_vm0, %v327_v11  ;;  %v296_v24 = vand.u32 2147483647, %v288_v15  ;;  %v2592_v26 = vld [vmem:[%s2509_s18 + $0x38] sm:$0xff]  ;;  %v328_v31 = vpack.c.bf16 %v2572_v17, %v2569_v16  ;;  %v290_v33 = vsub.f32 %v2569_v16, %v2580_v21  ;;  %v2611_v36 = vld [vmem:[%s2515_s7 + $0x30] sm:$0xff] }
  0x51   : > { %v310_v28 = vsel %vm302_vm0, %v295_v18, 0.0  ;;  %v297_v30 = vand.u32 2147483647, %v289_v19  ;;  %2014 = vmatmul.mubr.msk.bf16.vlgmr.msra.gmra.mrb[0].mxu1 %vm302_vm0, %v418_v20  ;;  %2022 = vmatpush3.bf16.msra.mxu0 %v2524_v0  ;;  %v291_v34 = vsub.f32 %v2572_v17, %v2583_v22  ;;  %v419_v35 = vpack.c.bf16 %v2583_v22, %v2580_v21  ;;  %v2614_v37 = vld [vmem:[%s2515_s7 + $0x38] sm:$0xff] }
  0x52   : > { %v303_v23 = vsel %vm302_vm0, %v294_v14, 0.0  ;;  %v304_v32 = vsel %vm302_vm0, %v296_v24, 0.0  ;;  %2032 = vmatpush3.bf16.msra.mxu1 %v2524_v0  ;;  %2041 = vmatprep.subr.bf16.mxu0 %v2524_v0  ;;  %v329_v40 = vpack.c.bf16 %v2592_v26, %v2589_v25  ;;  %v292_v41 = vsub.f32 %v2589_v25, %v2611_v36 }
  0x53   : > { %v305_v38 = vadd.f32 %v304_v32, %v303_v23  ;;  %v311_v39 = vsel %vm302_vm0, %v297_v30, 0.0  ;;  %2007 = vmatprep.mubr.msk.bf16.mxu0 %vm302_vm0, %v328_v31  ;;  %v298_v43 = vand.u32 2147483647, %v290_v33  ;;  %v299_v44 = vand.u32 2147483647, %v291_v34  ;;  %2017 = vmatprep.mubr.msk.bf16.mxu1 %vm302_vm0, %v419_v35 }
  0x54   : > { %v312_v42 = vadd.f32 %v311_v39, %v310_v28  ;;  %v293_v45 = vsub.f32 %v2592_v26, %v2614_v37  ;;  %v300_v46 = vand.u32 2147483647, %v292_v41  ;;  %v420_v47 = vpack.c.bf16 %v2614_v37, %v2611_v36 }
  0x55   : > { %v595_v49 = vmul.f32 %v2533_v3, %v2533_v3  ;;  %v306_v50 = vsel %vm302_vm0, %v298_v43, 0.0  ;;  %v313_v51 = vsel %vm302_vm0, %v299_v44, 0.0  ;;  %v596_v53 = vmul.f32 %v2540_v5, %v2540_v5 }
  0x56   : > { %v301_v52 = vand.u32 2147483647, %v293_v45  ;;  %v307_v54 = vadd.f32 %v306_v50, %v305_v38  ;;  %v314_v55 = vadd.f32 %v313_v51, %v312_v42  ;;  %v308_v56 = vsel %vm302_vm0, %v300_v46, 0.0 }
  0x57   : > { %v510_v57 = vpack.c.bf16 %v503_v48, %v502_v27  ;;  %v505_v58 = vmul.f32 %v2548_v8, %v2548_v8  ;;  %v597_v59 = vmul.f32 %v2559_v12, %v2559_v12  ;;  %v603_v61 = vpack.c.bf16 %v596_v53, %v595_v49 }
  0x58   : > { %2008 = vmatmul.mubr.msk.bf16.gmra.mrb[4].mxu0 %vm302_vm0, %v329_v40  ;;  %v315_v60 = vsel %vm302_vm0, %v301_v52, 0.0  ;;  %v598_v62 = vmul.f32 %v2562_v13, %v2562_v13  ;;  %v309_v63 = vadd.f32 %v308_v56, %v307_v54  ;;  %v506_v6 = vmul.f32 %v2569_v16, %v2569_v16 }
  0x59   : > { %v316_v4 = vadd.f32 %v315_v60, %v314_v55  ;;  %2018 = vmatmul.mubr.msk.bf16.gmra.mrb[4].mxu1 %vm302_vm0, %v420_v47  ;;  %2023 = vmatprep.mubr.msk.bf16.mxu0 %vm302_vm0, %v510_v57  ;;  %v507_v9 = vmul.f32 %v2572_v17, %v2572_v17  ;;  %v511_v15 = vpack.c.bf16 %v505_v58, %v504_v29 }
  0x5a   : > { %2033 = vmatprep.mubr.msk.bf16.mxu1 %vm302_vm0, %v603_v61  ;;  %v317_v10 = vsel %vm302_vm0, %v309_v63, 0.0  ;;  %v599_v18 = vmul.f32 %v2580_v21, %v2580_v21  ;;  %v604_v19 = vpack.c.bf16 %v598_v62, %v597_v59  ;;  %v600_v20 = vmul.f32 %v2583_v22, %v2583_v22 }
  0x5b   : > { %v318_v11 = vsel %vm302_vm0, %v316_v4, 0.0  ;;  %v512_v24 = vpack.c.bf16 %v507_v9, %v506_v6  ;;  %v508_v30 = vmul.f32 %v2589_v25, %v2589_v25  ;;  %v509_v29 = vmul.f32 %v2592_v26, %v2592_v26 }
  0x5c   : > { %v319_v14 = vadd.f32 %v318_v11, %v317_v10  ;;  %v605_v27 = vpack.c.bf16 %v600_v20, %v599_v18  ;;  %v688_v31 = vmul.f32 %v2533_v3, %v2527_v1  ;;  %v689_v32 = vmul.f32 %v2540_v5, %v2530_v2 }
  0x5d   : > { %v601_v33 = vmul.f32 %v2611_v36, %v2611_v36  ;;  %v602_v34 = vmul.f32 %v2614_v37, %v2614_v37  ;;  %v513_v3 = vpack.c.bf16 %v509_v29, %v508_v30  ;;  %v690_v5 = vmul.f32 %v2559_v12, %v2545_v7 }
  0x5e   : > { %v320_v23 = vrot.slane %v319_v14, 4  ;;  %v696_v38 = vpack.c.bf16 %v689_v32, %v688_v31  ;;  %v691_v40 = vmul.f32 %v2562_v13, %v2548_v8  ;;  %v692_v42 = vmul.f32 %v2580_v21, %v2569_v16 }
  0x5f   : > { %v606_v39 = vpack.c.bf16 %v602_v34, %v601_v33  ;;  %v693_v43 = vmul.f32 %v2583_v22, %v2572_v17  ;;  %v694_v8 = vmul.f32 %v2611_v36, %v2589_v25  ;;  %v695_v12 = vmul.f32 %v2614_v37, %v2592_v26 }
  0x60   : > { %v321_v28 = vadd.f32 %v320_v23, %v319_v14  ;;  %2024 = vmatmul.mubr.msk.bf16.vlgmr.msra.gmra.mrb[8].mxu0 %vm302_vm0, %v511_v15  ;;  %v697_v44 = vpack.c.bf16 %v691_v40, %v690_v5  ;;  %v2340_v16 = vmov 0.0  }
  0x61   : > { %2034 = vmatmul.mubr.msk.bf16.vlgmr.msra.gmra.mrb[8].mxu1 %vm302_vm0, %v604_v19  ;;  %2042 = vmatpush3.bf16.msra.mxu0 %v2524_v0  ;;  %v698_v7 = vpack.c.bf16 %v693_v43, %v692_v42  ;;  %v699_v13 = vpack.c.bf16 %v695_v12, %v694_v8 }
  0x62   : > { %v322_v35 = vrot.slane %v321_v28, 2  ;;  %2027 = vmatprep.mubr.msk.bf16.mxu0 %vm302_vm0, %v512_v24  ;;  %2037 = vmatprep.mubr.msk.bf16.mxu1 %vm302_vm0, %v605_v27 }
  0x63   : > { %2051 = vmatprep.subr.bf16.mxu1 %v2340_v16  ;;  %2063 = vmatprep.subr.bf16.mxu0 %v2340_v16 }
  0x64   : > { %v323_v1 = vadd.f32 %v322_v35, %v321_v28 }
  0x66   : > { %v324_v2 = vrot.slane %v323_v1, 1 }
  0x68   : > { %v325_v41 = vadd.f32 %v324_v2, %v323_v1  ;;  %2028 = vmatmul.mubr.msk.bf16.gmra.mrb[12].mxu0 %vm302_vm0, %v513_v3 }
  0x69   : > { %2043 = vmatprep.mubr.msk.bf16.mxu0 %vm302_vm0, %v696_v38  ;;  %2038 = vmatmul.mubr.msk.bf16.gmra.mrb[12].mxu1 %vm302_vm0, %v606_v39 }
  0x6a   : > { %1767 = vst.msk [vmem:[%s266_s12] sm:$0x1] %vm1765_vm1, %v325_v41  ;;  %2053 = vmatprep.mubr.msk.bf16.mxu1 %vm2341_vm2, %v2340_v16 }
  0x70   : > { %2044 = vmatmul.mubr.msk.bf16.vlgmr.msra.gmra.mrb[16].mxu0 %vm302_vm0, %v697_v44 }
  0x71   : > { %2047 = vmatprep.mubr.msk.bf16.mxu0 %vm302_vm0, %v698_v7 }
  0x78   : > { %2048 = vmatmul.mubr.msk.bf16.gmra.mrb[20].mxu0 %vm302_vm0, %v699_v13 }
  0x79   : > { %2065 = vmatprep.mubr.msk.bf16.mxu0 %vm2341_vm2, %v2340_v16 }
 0x123   : > { %v2005_v17 = vpop.f32.mrb[0].mxu0 }
 0x124   : > { %v382_v21 = vpop.f32.mrb[1].mxu0  ;;  %v2711_v22 = vpop.f32.mrb[0].mxu1 }
 0x125   : > { %v2006_v25 = vpop.f32.mrb[2].mxu0  ;;  %v467_v26 = vpop.f32.mrb[1].mxu1 }
 0x126   : > { %v414_v36 = vpack.c.bf16 %v2006_v25, %v2005_v17  ;;  %v385_v37 = vpop.f32.mrb[3].mxu0  ;;  %v2713_v45 = vpop.f32.mrb[2].mxu1 }
 0x127   : > { %v413_v46 = vpack.c.bf16 %v385_v37, %v382_v21  ;;  %v499_v47 = vpack.c.bf16 %v2713_v45, %v2711_v22  ;;  %v470_v48 = vpop.f32.mrb[3].mxu1 }
 0x128   : > { %v498_v49 = vpack.c.bf16 %v470_v48, %v467_v26 }
 0x129   : > { %2052 = vmatpush3.bf16.msra.mxu1 %v413_v46 }
 0x12a   : > { %2057 = vmatprep.subr.bf16.mxu1 %v2340_v16 }
 0x12b   : > { %v2718_v50 = vpop.f32.mrb[4].mxu0 }
 0x12c   : > { %v2720_v51 = vpop.f32.mrb[5].mxu0  ;;  %2054 = vmatmul.mubr.msk.bf16.vlgmr.msra.gmra.mrb[16].mxu1 %vm302_vm0, %v2524_v0  ;;  %v2724_v52 = vpop.f32.mrb[4].mxu1 }
 0x12d   : > { %v2726_v53 = vpop.f32.mrb[6].mxu0  ;;  %v2728_v54 = vpop.f32.mrb[5].mxu1  ;;  %2058 = vmatpush3.bf16.msra.mxu1 %v498_v49  ;;  %2059 = vmatprep.mubr.msk.bf16.mxu1 %vm2341_vm2, %v2340_v16 }
 0x12e   : > { %v416_v55 = vpack.c.bf16 %v2726_v53, %v2718_v50  ;;  %v2734_v56 = vpop.f32.mrb[7].mxu0  ;;  %v2736_v57 = vpop.f32.mrb[6].mxu1  ;;  %2069 = vmatprep.subr.bf16.mxu1 %v2340_v16 }
 0x12f   : > { %v415_v58 = vpack.c.bf16 %v2734_v56, %v2720_v51  ;;  %v501_v59 = vpack.c.bf16 %v2736_v57, %v2724_v52  ;;  %v2743_v60 = vpop.f32.mrb[7].mxu1 }
 0x130   : > { %v500_v61 = vpack.c.bf16 %v2743_v60, %v2728_v54 }
 0x133   : > { %v2025_v62 = vpop.f32.mrb[8].mxu0 }
 0x134   : > { %v2035_v63 = vpop.f32.mrb[8].mxu1  ;;  %v560_v4 = vpop.f32.mrb[9].mxu0  ;;  %2060 = vmatmul.mubr.msk.bf16.vlgmr.msra.gmra.mrb[20].mxu1 %vm302_vm0, %v2524_v0 }
 0x135   : > { %v653_v6 = vpop.f32.mrb[9].mxu1  ;;  %v2026_v9 = vpop.f32.mrb[10].mxu0  ;;  %2071 = vmatprep.mubr.msk.bf16.mxu1 %vm2341_vm2, %v2340_v16 }
 0x136   : > { %v592_v10 = vpack.c.bf16 %v2026_v9, %v2025_v62  ;;  %v2036_v11 = vpop.f32.mrb[10].mxu1  ;;  %v563_v14 = vpop.f32.mrb[11].mxu0 }
 0x137   : > { %v685_v15 = vpack.c.bf16 %v2036_v11, %v2035_v63  ;;  %v591_v18 = vpack.c.bf16 %v563_v14, %v560_v4  ;;  %v656_v19 = vpop.f32.mrb[11].mxu1 }
 0x138   : > { %v684_v20 = vpack.c.bf16 %v656_v19, %v653_v6 }
 0x139   : > { %2064 = vmatpush3.bf16.msra.mxu0 %v591_v18 }
 0x13a   : > { %2070 = vmatpush3.bf16.msra.mxu1 %v684_v20  ;;  %2075 = vmatprep.subr.bf16.mxu0 %v2340_v16 }
 0x13b   : > { %v2752_v23 = vpop.f32.mrb[12].mxu0  ;;  %2081 = vmatprep.subr.bf16.mxu1 %v2340_v16 }
 0x13c   : > { %v576_v24 = vpop.f32.mrb[13].mxu0  ;;  %2066 = vmatmul.mubr.msk.bf16.vlgmr.msra.gmra.mrb[24].mxu0 %vm302_vm0, %v2524_v0  ;;  %v2757_v27 = vpop.f32.mrb[12].mxu1 }
 0x13d   : > { %2072 = vmatmul.mubr.msk.bf16.vlgmr.msra.gmra.mrb[24].mxu1 %vm302_vm0, %v2524_v0  ;;  %v2761_v28 = vpop.f32.mrb[14].mxu0  ;;  %2077 = vmatprep.mubr.msk.bf16.mxu0 %vm2341_vm2, %v2340_v16  ;;  %v669_v30 = vpop.f32.mrb[13].mxu1 }
 0x13e   : > { %v594_v29 = vpack.c.bf16 %v2761_v28, %v2752_v23  ;;  %2082 = vmatpush3.bf16.msra.mxu1 %v414_v36  ;;  %v579_v31 = vpop.f32.mrb[15].mxu0  ;;  %2083 = vmatprep.mubr.msk.bf16.mxu1 %vm2341_vm2, %v2340_v16  ;;  %v2769_v32 = vpop.f32.mrb[14].mxu1 }
 0x13f   : > { %v593_v33 = vpack.c.bf16 %v579_v31, %v576_v24  ;;  %2093 = vmatprep.subr.bf16.mxu1 %v2340_v16  ;;  %v687_v34 = vpack.c.bf16 %v2769_v32, %v2757_v27  ;;  %v672_v35 = vpop.f32.mrb[15].mxu1 }
 0x140   : > { %v686_v1 = vpack.c.bf16 %v672_v35, %v669_v30 }
 0x143   : > { %v2045_v3 = vpop.f32.mrb[16].mxu0 }
 0x144   : > { %v746_v38 = vpop.f32.mrb[17].mxu0 }
 0x145   : > { %2084 = vmatmul.mubr.msk.bf16.vlgmr.msra.gmra.mrb[28].mxu1 %vm302_vm0, %v2524_v0  ;;  %v2046_v39 = vpop.f32.mrb[18].mxu0 }
 0x146   : > { %2094 = vmatpush3.bf16.msra.mxu1 %v592_v10  ;;  %v778_v2 = vpack.c.bf16 %v2046_v39, %v2045_v3  ;;  %v749_v5 = vpop.f32.mrb[19].mxu0  ;;  %2095 = vmatprep.mubr.msk.bf16.mxu1 %vm2341_vm2, %v2340_v16 }
 0x147   : > { %v777_v40 = vpack.c.bf16 %v749_v5, %v746_v38  ;;  %2105 = vmatprep.subr.bf16.mxu1 %v2340_v16 }
 0x149   : > { %2076 = vmatpush3.bf16.msra.mxu0 %v777_v40 }
 0x14a   : > { %2087 = vmatprep.subr.bf16.mxu0 %v2340_v16 }
 0x14b   : > { %v2049_v41 = vpop.f32.mrb[20].mxu0 }
 0x14c   : > { %2078 = vmatmul.mubr.msk.bf16.vlgmr.msra.gmra.mrb[28].mxu0 %vm302_vm0, %v2524_v0  ;;  %v762_v42 = vpop.f32.mrb[21].mxu0 }
 0x14d   : > { %2096 = vmatmul.mubr.msk.bf16.vlgmr.msra.gmra.mrb[32].mxu1 %vm302_vm0, %v2524_v0  ;;  %2088 = vmatpush3.bf16.msra.mxu0 %v499_v47  ;;  %v2050_v43 = vpop.f32.mrb[22].mxu0 }
 0x14e   : > { %2106 = vmatpush3.bf16.msra.mxu1 %v778_v2  ;;  %2089 = vmatprep.mubr.msk.bf16.mxu0 %vm2341_vm2, %v2340_v16  ;;  %v780_v44 = vpack.c.bf16 %v2050_v43, %v2049_v41  ;;  %v765_v7 = vpop.f32.mrb[23].mxu0 }
 0x14f   : > { %2099 = vmatprep.subr.bf16.mxu0 %v2340_v16  ;;  %2107 = vmatprep.mubr.msk.bf16.mxu1 %vm2341_vm2, %v2340_v16  ;;  %v779_v8 = vpack.c.bf16 %v765_v7, %v762_v42 }
 0x150   : > { %2117 = vmatprep.subr.bf16.mxu1 %v2340_v16 }
 0x154   : > { %2090 = vmatmul.mubr.msk.bf16.vlgmr.msra.gmra.mrb[32].mxu0 %vm302_vm0, %v2524_v0 }
 0x155   : > { %2100 = vmatpush3.bf16.msra.mxu0 %v685_v15  ;;  %2108 = vmatmul.mubr.msk.bf16.vlgmr.msra.gmra.mrb[36].mxu1 %vm302_vm0, %v2524_v0 }
 0x156   : > { %2118 = vmatpush3.bf16.msra.mxu1 %v500_v61  ;;  %2101 = vmatprep.mubr.msk.bf16.mxu0 %vm2341_vm2, %v2340_v16 }
 0x157   : > { %2111 = vmatprep.subr.bf16.mxu0 %v2340_v16  ;;  %2119 = vmatprep.mubr.msk.bf16.mxu1 %vm2341_vm2, %v2340_v16 }
 0x158   : > { %2129 = vmatprep.subr.bf16.mxu1 %v2340_v16 }
 0x15c   : > { %2102 = vmatmul.mubr.msk.bf16.vlgmr.msra.gmra.mrb[36].mxu0 %vm302_vm0, %v2524_v0 }
 0x15d   : > { %2112 = vmatpush3.bf16.msra.mxu0 %v415_v58  ;;  %2120 = vmatmul.mubr.msk.bf16.vlgmr.msra.gmra.mrb[40].mxu1 %vm302_vm0, %v2524_v0 }
 0x15e   : > { %2130 = vmatpush3.bf16.msra.mxu1 %v686_v1  ;;  %2113 = vmatprep.mubr.msk.bf16.mxu0 %vm2341_vm2, %v2340_v16 }
 0x15f   : > { %2123 = vmatprep.subr.bf16.mxu0 %v2340_v16  ;;  %2131 = vmatprep.mubr.msk.bf16.mxu1 %vm2341_vm2, %v2340_v16 }
 0x160   : > { %2141 = vmatprep.subr.bf16.mxu1 %v2340_v16 }
 0x164   : > { %2114 = vmatmul.mubr.msk.bf16.vlgmr.msra.gmra.mrb[40].mxu0 %vm302_vm0, %v2524_v0 }
 0x165   : > { %2124 = vmatpush3.bf16.msra.mxu0 %v593_v33  ;;  %2132 = vmatmul.mubr.msk.bf16.vlgmr.msra.gmra.mrb[44].mxu1 %vm302_vm0, %v2524_v0 }
 0x166   : > { %2142 = vmatpush3.bf16.msra.mxu1 %v416_v55  ;;  %2125 = vmatprep.mubr.msk.bf16.mxu0 %vm2341_vm2, %v2340_v16 }
 0x167   : > { %2143 = vmatprep.mubr.msk.bf16.mxu1 %vm2341_vm2, %v2340_v16  ;;  %2153 = vmatprep.subr.bf16.mxu1 %v2340_v16 }
 0x168   : > { %2135 = vmatprep.subr.bf16.mxu0 %v2340_v16 }
 0x16c   : > { %2126 = vmatmul.mubr.msk.bf16.vlgmr.msra.gmra.mrb[44].mxu0 %vm302_vm0, %v2524_v0 }
 0x16d   : > { %2144 = vmatmul.mubr.msk.bf16.vlgmr.msra.gmra.mrb[48].mxu1 %vm302_vm0, %v2524_v0  ;;  %2136 = vmatpush3.bf16.msra.mxu0 %v779_v8 }
 0x16e   : > { %2154 = vmatpush3.bf16.msra.mxu1 %v594_v29  ;;  %2137 = vmatprep.mubr.msk.bf16.mxu0 %vm2341_vm2, %v2340_v16 }
 0x16f   : > { %2147 = vmatprep.subr.bf16.mxu0 %v2340_v16  ;;  %2155 = vmatprep.mubr.msk.bf16.mxu1 %vm2341_vm2, %v2340_v16 }
 0x170   : > { %2165 = vmatprep.subr.bf16.mxu1 %v2340_v16 }
 0x174   : > { %2138 = vmatmul.mubr.msk.bf16.vlgmr.msra.gmra.mrb[48].mxu0 %vm302_vm0, %v2524_v0 }
 0x175   : > { %2148 = vmatpush3.bf16.msra.mxu0 %v501_v59  ;;  %2156 = vmatmul.mubr.msk.bf16.vlgmr.msra.gmra.mrb[52].mxu1 %vm302_vm0, %v2524_v0 }
 0x176   : > { %2166 = vmatpush3.bf16.msra.mxu1 %v780_v44  ;;  %2149 = vmatprep.mubr.msk.bf16.mxu0 %vm2341_vm2, %v2340_v16 }
 0x177   : > { %2159 = vmatprep.subr.bf16.mxu0 %v2340_v16  ;;  %2167 = vmatprep.mubr.msk.bf16.mxu1 %vm2341_vm2, %v2340_v16 }
 0x17c   : > { %2150 = vmatmul.mubr.msk.bf16.vlgmr.msra.gmra.mrb[52].mxu0 %vm302_vm0, %v2524_v0 }
 0x17d   : > { %2160 = vmatpush3.bf16.msra.mxu0 %v687_v34  ;;  %2168 = vmatmul.mubr.msk.bf16.vlgmr.msra.gmra.mrb[56].mxu1 %vm302_vm0, %v2524_v0 }
 0x17e   : > { %2161 = vmatprep.mubr.msk.bf16.mxu0 %vm2341_vm2, %v2340_v16 }
 0x184   : > { %2162 = vmatmul.mubr.msk.bf16.vlgmr.msra.gmra.mrb[56].mxu0 %vm302_vm0, %v2524_v0 }
 0x1ff   : > { %v818_v12 = vpop.f32.mrb[16].mxu1 }
 0x200   : > { %v2055_v13 = vpop.f32.mrb[17].mxu1  ;;  %v989_v25 = vmul.f32 %v818_v12, %v818_v12 }
 0x201   : > { %v821_v17 = vpop.f32.mrb[18].mxu1 }
 0x202   : > { %v2056_v21 = vpop.f32.mrb[19].mxu1  ;;  %v990_v26 = vmul.f32 %v821_v17, %v821_v17 }
 0x207   : > { %v859_v22 = vpop.f32.mrb[20].mxu1 }
 0x208   : > { %v991_v36 = vmul.f32 %v859_v22, %v859_v22  ;;  %v993_v37 = vmul.f32 %v859_v22, %v818_v12  ;;  %v2061_v45 = vpop.f32.mrb[21].mxu1 }
 0x209   : > { %v862_v46 = vpop.f32.mrb[22].mxu1 }
 0x20a   : > { %v1011_v47 = vadd.f32 %v991_v36, %v989_v25  ;;  %v992_v48 = vmul.f32 %v862_v46, %v862_v46  ;;  %v994_v49 = vmul.f32 %v862_v46, %v821_v17  ;;  %v2062_v50 = vpop.f32.mrb[23].mxu1  ;;  %v1001_v28 = vmul.f32 2.0, %v993_v37 }
 0x20c   : > { %v1012_v51 = vadd.f32 %v992_v48, %v990_v26  ;;  %v1013_v60 = vadd.f32 0.0001, %v1011_v47  ;;  %v1002_v35 = vmul.f32 2.0, %v994_v49  ;;  %v1003_v40 = vadd.f32 0.0001, %v1001_v28 }
 0x20e   : > { %v1014_v9 = vadd.f32 0.0001, %v1012_v51  ;;  %v1004_v43 = vadd.f32 0.0001, %v1002_v35 }
 0x20f   : > { %v900_v16 = vpop.f32.mrb[24].mxu0 }
 0x210   : > { %v995_v52 = vsub.f32 %v900_v16, %v989_v25  ;;  %v941_v53 = vpop.f32.mrb[24].mxu1  ;;  %v2067_v0 = vpop.f32.mrb[25].mxu0 }
 0x211   : > { %v997_v54 = vsub.f32 %v941_v53, %v991_v36  ;;  %v2073_v55 = vpop.f32.mrb[25].mxu1  ;;  %v903_v56 = vpop.f32.mrb[26].mxu0 }
 0x212   : > { %v996_v57 = vsub.f32 %v903_v56, %v990_v26  ;;  %v944_v58 = vpop.f32.mrb[26].mxu1  ;;  %v2068_v59 = vpop.f32.mrb[27].mxu0 }
 0x213   : > { %v1015_v61 = vadd.f32 %v997_v54, %v995_v52  ;;  %v998_v62 = vsub.f32 %v944_v58, %v992_v48  ;;  %v2074_v63 = vpop.f32.mrb[27].mxu1 }
 0x215   : > { %v1017_v4 = vadd.f32 0.0009, %v1015_v61  ;;  %v1016_v6 = vadd.f32 %v998_v62, %v996_v57 }
 0x217   : > { %v1019_v10 = vmul.f32 %v1017_v4, %v1013_v60  ;;  %v1018_v11 = vadd.f32 0.0009, %v1016_v6 }
 0x218   : > { %v1061_v14 = vpop.f32.mrb[28].mxu1 }
 0x219   : > { %v1020_v15 = vmul.f32 %v1018_v11, %v1014_v9  ;;  %v2085_v18 = vpop.f32.mrb[29].mxu1  ;;  %2220 = vrcp.f32 %v1019_v10  ;;  %v1232_v23 = vmul.f32 %v1061_v14, %v1061_v14 }
 0x21a   : > { %v1064_v19 = vpop.f32.mrb[30].mxu1 }
 0x21b   : > { %v2086_v20 = vpop.f32.mrb[31].mxu1  ;;  %2222 = vrcp.f32 %v1020_v15  ;;  %v2865_v27 = vmul.f32 %v1064_v19, %v1064_v19 }
 0x21f   : > { %v982_v24 = vpop.f32.mrb[28].mxu0 }
 0x220   : > { %v999_v30 = vsub.f32 %v982_v24, %v993_v37  ;;  %v2079_v29 = vpop.f32.mrb[29].mxu0  ;;  %v1143_v31 = vpop.f32.mrb[32].mxu1 }
 0x221   : > { %v985_v32 = vpop.f32.mrb[30].mxu0  ;;  %v1238_v33 = vsub.f32 %v1143_v31, %v1232_v23  ;;  %v2097_v34 = vpop.f32.mrb[33].mxu1 }
 0x222   : > { %v1005_v1 = vmul.f32 2.0, %v999_v30  ;;  %v1000_v3 = vsub.f32 %v985_v32, %v994_v49  ;;  %v2080_v38 = vpop.f32.mrb[31].mxu0  ;;  %v1146_v39 = vpop.f32.mrb[34].mxu1 }
 0x223   : > { %v1239_v2 = vsub.f32 %v1146_v39, %v2865_v27  ;;  %v2098_v5 = vpop.f32.mrb[35].mxu1  ;;  %v2221_v8 = vpop.eup %2220 }
 0x224   : > { %v1007_v41 = vadd.f32 0.0009, %v1005_v1  ;;  %v1006_v42 = vmul.f32 2.0, %v1000_v3 }
 0x225   : > { %v2223_v36 = vpop.eup %2222 }
 0x226   : > { %v1009_v44 = vmul.f32 %v1007_v41, %v1003_v40  ;;  %v1008_v7 = vadd.f32 0.0009, %v1006_v42 }
 0x227   : > { %v1102_v12 = vpop.f32.mrb[32].mxu0 }
 0x228   : > { %v2868_v13 = vmul.f32 %v2221_v8, %v1009_v44  ;;  %v1010_v17 = vmul.f32 %v1008_v7, %v1004_v43  ;;  %v1234_v21 = vmul.f32 %v1102_v12, %v1102_v12  ;;  %v1236_v22 = vmul.f32 %v1102_v12, %v1061_v14  ;;  %v2091_v25 = vpop.f32.mrb[33].mxu0  ;;  %v1225_v26 = vpop.f32.mrb[36].mxu1 }
 0x229   : > { %v1105_v37 = vpop.f32.mrb[34].mxu0  ;;  %v2109_v45 = vpop.f32.mrb[37].mxu1 }
 0x22a   : > { %v2870_v46 = vmul.f32 %v2223_v36, %v1010_v17  ;;  %v1254_v47 = vadd.f32 %v1234_v21, %v1232_v23  ;;  %v1235_v48 = vmul.f32 %v1105_v37, %v1105_v37  ;;  %v2092_v49 = vpop.f32.mrb[35].mxu0  ;;  %v1228_v50 = vpop.f32.mrb[38].mxu1  ;;  %v1244_v51 = vmul.f32 2.0, %v1236_v22 }
 0x22b   : > { %v1237_v16 = vmul.f32 %v1105_v37, %v1064_v19  ;;  %v1242_v52 = vsub.f32 %v1225_v26, %v1236_v22  ;;  %v2110_v53 = vpop.f32.mrb[39].mxu1 }
 0x22c   : > { %v1255_v0 = vadd.f32 %v1235_v48, %v2865_v27  ;;  %v1246_v57 = vadd.f32 0.0001, %v1244_v51  ;;  %v1256_v24 = vadd.f32 0.0001, %v1254_v47 }
 0x22d   : > { %v1245_v54 = vmul.f32 2.0, %v1237_v16  ;;  %v1248_v55 = vmul.f32 2.0, %v1242_v52  ;;  %v1243_v56 = vsub.f32 %v1228_v50, %v1237_v16 }
 0x22e   : > { %v1257_v30 = vadd.f32 0.0001, %v1255_v0 }
 0x22f   : > { %v1250_v58 = vadd.f32 0.0009, %v1248_v55  ;;  %v1249_v59 = vmul.f32 2.0, %v1243_v56  ;;  %v1184_v60 = vpop.f32.mrb[36].mxu0  ;;  %v1247_v4 = vadd.f32 0.0001, %v1245_v54 }
 0x230   : > { %v1240_v61 = vsub.f32 %v1184_v60, %v1234_v21  ;;  %v2103_v62 = vpop.f32.mrb[37].mxu0  ;;  %v1345_v63 = vpop.f32.mrb[40].mxu1 }
 0x231   : > { %v1252_v6 = vmul.f32 %v1250_v58, %v1246_v57  ;;  %v1251_v9 = vadd.f32 0.0009, %v1249_v59  ;;  %v1187_v10 = vpop.f32.mrb[38].mxu0  ;;  %v2121_v11 = vpop.f32.mrb[41].mxu1  ;;  %v1477_v32 = vmul.f32 %v1345_v63, %v1345_v63 }
 0x232   : > { %v1258_v14 = vadd.f32 %v1240_v61, %v1238_v33  ;;  %v1241_v15 = vsub.f32 %v1187_v10, %v1235_v48  ;;  %v2104_v18 = vpop.f32.mrb[39].mxu0  ;;  %v1348_v19 = vpop.f32.mrb[42].mxu1 }
 0x233   : > { %v1253_v20 = vmul.f32 %v1251_v9, %v1247_v4  ;;  %v2122_v23 = vpop.f32.mrb[43].mxu1  ;;  %v1478_v35 = vmul.f32 %v1348_v19, %v1348_v19 }
 0x234   : > { %v1260_v27 = vadd.f32 0.0009, %v1258_v14  ;;  %v1259_v28 = vadd.f32 %v1241_v15, %v1239_v2 }
 0x236   : > { %v1262_v29 = vmul.f32 %v1260_v27, %v1256_v24  ;;  %v1261_v31 = vadd.f32 0.0009, %v1259_v28 }
 0x237   : > { %v1304_v34 = vpop.f32.mrb[40].mxu0 }
 0x238   : > { %2224 = vrcp.f32 %v1262_v29  ;;  %v1263_v1 = vmul.f32 %v1261_v31, %v1257_v30  ;;  %v1475_v3 = vmul.f32 %v1304_v34, %v1304_v34  ;;  %v2115_v38 = vpop.f32.mrb[41].mxu0  ;;  %v1479_v39 = vmul.f32 %v1345_v63, %v1304_v34  ;;  %v1427_v33 = vpop.f32.mrb[44].mxu1 }
 0x239   : > { %v1307_v5 = vpop.f32.mrb[42].mxu0  ;;  %v1483_v40 = vsub.f32 %v1427_v33, %v1477_v32  ;;  %v2133_v41 = vpop.f32.mrb[45].mxu1 }
 0x23a   : > { %2226 = vrcp.f32 %v1263_v1  ;;  %v1497_v42 = vadd.f32 %v1477_v32, %v1475_v3  ;;  %v1476_v43 = vmul.f32 %v1307_v5, %v1307_v5  ;;  %v2116_v44 = vpop.f32.mrb[43].mxu0  ;;  %v1430_v2 = vpop.f32.mrb[46].mxu1  ;;  %v1480_v7 = vmul.f32 %v1348_v19, %v1307_v5 }
 0x23b   : > { %v1484_v8 = vsub.f32 %v1430_v2, %v1478_v35  ;;  %v2134_v12 = vpop.f32.mrb[47].mxu1  ;;  %v1487_v4 = vmul.f32 2.0, %v1479_v39 }
 0x23c   : > { %v1498_v17 = vadd.f32 %v1478_v35, %v1476_v43  ;;  %v1499_v53 = vadd.f32 0.0001, %v1497_v42  ;;  %v1488_v18 = vmul.f32 2.0, %v1480_v7 }
 0x23d   : > { %v1489_v28 = vadd.f32 0.0001, %v1487_v4 }
 0x23e   : > { %v1500_v58 = vadd.f32 0.0001, %v1498_v17  ;;  %v1490_v31 = vadd.f32 0.0001, %v1488_v18 }
 0x23f   : > { %v1386_v21 = vpop.f32.mrb[44].mxu0 }
 0x240   : > { %v1481_v22 = vsub.f32 %v1386_v21, %v1475_v3  ;;  %v2127_v25 = vpop.f32.mrb[45].mxu0  ;;  %v1547_v26 = vpop.f32.mrb[48].mxu1 }
 0x241   : > { %v1389_v36 = vpop.f32.mrb[46].mxu0  ;;  %v2145_v37 = vpop.f32.mrb[49].mxu1  ;;  %v2874_v57 = vmul.f32 %v1547_v26, %v1547_v26 }
 0x242   : > { %v2225_v45 = vpop.eup %2224  ;;  %v1501_v47 = vadd.f32 %v1483_v40, %v1481_v22  ;;  %v1482_v48 = vsub.f32 %v1389_v36, %v1476_v43  ;;  %v2128_v49 = vpop.f32.mrb[47].mxu0 }
 0x243   : > { %v1550_v50 = vpop.f32.mrb[50].mxu1  ;;  %v1266_v51 = vmul.f32 %v2225_v45, %v1252_v6 }
 0x244   : > { %v2146_v16 = vpop.f32.mrb[51].mxu1  ;;  %v2227_v52 = vpop.eup %2226  ;;  %v1503_v0 = vadd.f32 0.0009, %v1501_v47  ;;  %v1502_v54 = vadd.f32 %v1484_v8, %v1482_v48  ;;  %v2877_v63 = vmul.f32 %v1550_v50, %v1550_v50 }
 0x245   : > { %v1268_v55 = vadd.f32 %v1266_v51, %v2868_v13  ;;  %v1267_v56 = vmul.f32 %v2227_v52, %v1253_v20 }
 0x246   : > { %v1505_v59 = vmul.f32 %v1503_v0, %v1499_v53  ;;  %v1504_v60 = vadd.f32 0.0009, %v1502_v54 }
 0x247   : > { %v1468_v61 = vpop.f32.mrb[48].mxu0  ;;  %v1269_v62 = vadd.f32 %v1267_v56, %v2870_v46 }
 0x248   : > { %2228 = vrcp.f32 %v1505_v59  ;;  %v1506_v6 = vmul.f32 %v1504_v60, %v1500_v58  ;;  %v1485_v9 = vsub.f32 %v1468_v61, %v1479_v39  ;;  %v2139_v10 = vpop.f32.mrb[49].mxu0  ;;  %v1629_v11 = vpop.f32.mrb[52].mxu1 }
 0x249   : > { %v1471_v14 = vpop.f32.mrb[50].mxu0  ;;  %v1724_v13 = vsub.f32 %v1629_v11, %v2874_v57  ;;  %v2157_v15 = vpop.f32.mrb[53].mxu1 }
 0x24a   : > { %2230 = vrcp.f32 %v1506_v6  ;;  %v1491_v19 = vmul.f32 2.0, %v1485_v9  ;;  %v1486_v20 = vsub.f32 %v1471_v14, %v1480_v7  ;;  %v2140_v23 = vpop.f32.mrb[51].mxu0  ;;  %v1632_v24 = vpop.f32.mrb[54].mxu1 }
 0x24b   : > { %v1725_v46 = vsub.f32 %v1632_v24, %v2877_v63  ;;  %v2158_v27 = vpop.f32.mrb[55].mxu1 }
 0x24c   : > { %v1493_v30 = vadd.f32 0.0009, %v1491_v19  ;;  %v1492_v29 = vmul.f32 2.0, %v1486_v20 }
 0x24e   : > { %v1495_v32 = vmul.f32 %v1493_v30, %v1489_v28  ;;  %v1494_v34 = vadd.f32 0.0009, %v1492_v29 }
 0x24f   : > { %v1588_v35 = vpop.f32.mrb[52].mxu0 }
 0x250   : > { %v1496_v1 = vmul.f32 %v1494_v34, %v1490_v31  ;;  %v1720_v3 = vmul.f32 %v1588_v35, %v1588_v35  ;;  %v1722_v38 = vmul.f32 %v1588_v35, %v1547_v26  ;;  %v2151_v39 = vpop.f32.mrb[53].mxu0  ;;  %v1711_v33 = vpop.f32.mrb[56].mxu1 }
 0x251   : > { %v1591_v5 = vpop.f32.mrb[54].mxu0  ;;  %v2169_v40 = vpop.f32.mrb[57].mxu1 }
 0x252   : > { %v2229_v41 = vpop.eup %2228  ;;  %v1740_v42 = vadd.f32 %v1720_v3, %v2874_v57  ;;  %v1721_v43 = vmul.f32 %v1591_v5, %v1591_v5  ;;  %v1723_v44 = vmul.f32 %v1591_v5, %v1550_v50  ;;  %v2152_v2 = vpop.f32.mrb[55].mxu0  ;;  %v1730_v12 = vmul.f32 2.0, %v1722_v38 }
 0x253   : > { %v1714_v7 = vpop.f32.mrb[58].mxu1  ;;  %v1509_v8 = vmul.f32 %v2229_v41, %v1495_v32  ;;  %v1728_v17 = vsub.f32 %v1711_v33, %v1722_v38 }
 0x254   : > { %v2170_v21 = vpop.f32.mrb[59].mxu1  ;;  %v2231_v22 = vpop.eup %2230  ;;  %v1731_v25 = vmul.f32 2.0, %v1723_v44  ;;  %v1741_v36 = vadd.f32 %v1721_v43, %v2877_v63  ;;  %v1729_v47 = vsub.f32 %v1714_v7, %v1723_v44  ;;  %v1732_v49 = vadd.f32 0.0001, %v1730_v12 }
 0x255   : > { %v1511_v26 = vadd.f32 %v1509_v8, %v1268_v55  ;;  %v1510_v37 = vmul.f32 %v2231_v22, %v1496_v1  ;;  %v1734_v45 = vmul.f32 2.0, %v1728_v17  ;;  %v1742_v63 = vadd.f32 0.0001, %v1740_v42 }
 0x256   : > { %v1735_v16 = vmul.f32 2.0, %v1729_v47  ;;  %v1733_v0 = vadd.f32 0.0001, %v1731_v25  ;;  %v1743_v6 = vadd.f32 0.0001, %v1741_v36 }
 0x257   : > { %v1512_v48 = vadd.f32 %v1510_v37, %v1269_v62  ;;  %v1736_v51 = vadd.f32 0.0009, %v1734_v45  ;;  %v1670_v52 = vpop.f32.mrb[56].mxu0 }
 0x258   : > { %v1726_v50 = vsub.f32 %v1670_v52, %v1720_v3  ;;  %v2163_v53 = vpop.f32.mrb[57].mxu0  ;;  %v1737_v56 = vadd.f32 0.0009, %v1735_v16 }
 0x259   : > { %v1738_v54 = vmul.f32 %v1736_v51, %v1732_v49  ;;  %v1673_v57 = vpop.f32.mrb[58].mxu0 }
 0x25a   : > { %v1744_v58 = vadd.f32 %v1726_v50, %v1724_v13  ;;  %v1727_v59 = vsub.f32 %v1673_v57, %v1721_v43  ;;  %v2164_v60 = vpop.f32.mrb[59].mxu0  ;;  %v1739_v61 = vmul.f32 %v1737_v56, %v1733_v0 }
 0x25c   : > { %v1746_v55 = vadd.f32 0.0009, %v1744_v58  ;;  %v1745_v4 = vadd.f32 %v1727_v59, %v1725_v46 }
 0x25e   : > { %v1748_v9 = vmul.f32 %v1746_v55, %v1742_v63  ;;  %v1747_v62 = vadd.f32 0.0009, %v1745_v4 }
 0x260   : > { %2232 = vrcp.f32 %v1748_v9  ;;  %v1749_v10 = vmul.f32 %v1747_v62, %v1743_v6 }
 0x262   : > { %2234 = vrcp.f32 %v1749_v10 }
 0x26a   : > { %v2233_v11 = vpop.eup %2232 }
 0x26b   : > { %v1752_v14 = vmul.f32 %v2233_v11, %v1738_v54 }
 0x26c   : > { %v2235_v15 = vpop.eup %2234 }
 0x26d   : > { %v1754_v18 = vadd.f32 %v1752_v14, %v1511_v26  ;;  %v1753_v19 = vmul.f32 %v2235_v15, %v1739_v61 }
 0x26f   : > { %v1755_v20 = vadd.f32 %v1753_v19, %v1512_v48  ;;  %v1756_v13 = vsel %vm302_vm0, %v1754_v18, 0.0 }
 0x271   : > { %v1757_v23 = vsel %vm302_vm0, %v1755_v20, 0.0 }
 0x272   : > { %v1758_v24 = vadd.f32 %v1757_v23, %v1756_v13 }
 0x274   : > { %v1759_v27 = vrot.slane %v1758_v24, 4 }
 0x276   : > { %v1760_v46 = vadd.f32 %v1759_v27, %v1758_v24 }
 0x278   : > { %v1761_v28 = vrot.slane %v1760_v46, 2 }
 0x27a   : > { %v1762_v30 = vadd.f32 %v1761_v28, %v1760_v46 }
 0x27c   : > { %v1763_v29 = vrot.slane %v1762_v30, 1 }
 0x27e   : > { %v1764_v31 = vadd.f32 %v1763_v29, %v1762_v30 }
 0x280   : > { %1766 = vst.msk [vmem:[%s263_s27] sm:$0x1] %vm1765_vm1, %v1764_v31 }
 0x281 PF: > { %p18_p11 = scmp.ge.s32.totalorder %s2389_s20, 4   ;;  %s2914_s15 = smov %s2326_s16 }
 0x282   : > { %s2915_s16 = smov %s2330_s17  ;;  %s2916_s17 = smov %s2399_s23 }
 0x283   : > { %s2917_s18 = smov %s2389_s20  ;;  %20 = sbr.rel (!%p18_p11) target bundleno = 5 (0x5), region = 97 }
 0x28a   :  { %1797 = vsyncpa [#allocation3], 1 }
 0x28b   :  { %1799 = vsyncpa [#allocation3 + $0x1], 1 }
 0x28c   :  { %1800 = vsyncpa [#allocation5], 1 }
 0x28d   :  { %1802 = vsyncpa [#allocation5 + $0x1], 1 }

</bundles_post_ra>
